<compile_context>
chip_gen: v5e
topology: v5e:2x2
jax: 0.10.0
libtpu: 0.0.40
codegen_flags: <defaults>
</compile_context>

<pallas_src>
import functools

import jax
import jax.numpy as jnp
from jax import lax
from jax.experimental import pallas as pl
from jax.experimental.pallas import tpu as pltpu

NEG_SLOPE = 0.2      # PyG GATConv default LeakyReLU slope
NEG_INF = -1e30
LANES = 128


# --------------------------------------------------------------------------
# parameter packing (wrapper side, runs once)
# --------------------------------------------------------------------------
def _row_layout(f_in, h1, h2, r1, r2):
    """Row offsets of each matrix inside the packed weight slab."""
    order = (("W1aug", f_in), ("W2aug", h1), ("c1w1", h1), ("c1w2", r1),
             ("c2w1", h2), ("c2w2", r2), ("Wf", h2))
    rows, r = {}, 0
    for name, n in order:
        rows[name] = r
        r += n
    return rows, r


def pack_params(params):
    (W1, a1s, a1d, b1, c1w1, c1b1, c1w2, c1b2,
     W2, a2s, a2d, b2, c2w1, c2b1, c2w2, c2b2,
     Wr, br, Wf, bf) = params
    f_in, h1 = W1.shape
    h2 = W2.shape[1]
    r1 = c1w1.shape[1]
    r2 = c2w1.shape[1]

    # algebraic pre-folds
    u_d1 = W1 @ a1d.T            # [f_in, 1]  -> column of layer-1 projection
    u_d2 = W2 @ a2d.T            # [h1, 1]    -> column of layer-2 projection
    u_s1 = a1s @ W1.T            # [1, f_in]  -> row vec, contracted with x
    u_s2 = a2s @ W2.T            # [1, h1]    -> row vec, contracted with g1
    Wrf = Wr @ Wf                # [f_in, 1]  residual folded through fc
    brf = br @ Wf + bf           # [1, 1]

    W1aug = jnp.concatenate([W1, u_d1, Wrf], axis=1)     # [f_in, h1+2]
    W2aug = jnp.concatenate([W2, u_d2], axis=1)          # [h1,  h2+1]

    def pad_cols(m):
        m = m.astype(jnp.float32)
        return jnp.pad(m, ((0, 0), (0, LANES - m.shape[1])))

    rows, total = _row_layout(f_in, h1, h2, r1, r2)
    wslab = jnp.concatenate(
        [pad_cols(W1aug), pad_cols(W2aug), pad_cols(c1w1), pad_cols(c1w2),
         pad_cols(c2w1), pad_cols(c2w2), pad_cols(Wf)], axis=0)
    assert wslab.shape == (total, LANES)

    def row(v):
        return pad_cols(v.reshape(1, -1))

    vrows = [row(b1), row(c1b1), row(c1b2), row(b2), row(c2b1), row(c2b2),
             row(brf), row(u_s1), row(u_s2)]
    n_pad = (-len(vrows)) % 8
    vslab = jnp.concatenate(
        vrows + [jnp.zeros((n_pad, LANES), jnp.float32)], axis=0)

    return wslab, vslab, (f_in, h1, h2, r1, r2)


# --------------------------------------------------------------------------
# kernel
# --------------------------------------------------------------------------
def _attend(mask, a_dst, a_src_row, h):
    """Masked per-target softmax aggregation for one GAT head."""
    e = a_dst + a_src_row                                    # [N, N]
    # fused LeakyReLU + edge mask (single pair of selects, shared mask)
    e = jnp.where(mask, jnp.where(e > 0, e, NEG_SLOPE * e), NEG_INF)
    e = e - jnp.max(e, axis=-1, keepdims=True)
    p = jnp.exp(e)                  # masked entries underflow to exactly 0
    inv = pl.reciprocal(jnp.sum(p, axis=-1, keepdims=True), approx=True)
    return jnp.dot(p * inv, h, preferred_element_type=jnp.float32)


def _channel_attention(x, w1, b1, w2, b2):
    # TODO(synk): ChannelAttention is not defined in the reference source; assumed
    # SE-style squeeze-excitation over the node axis (mean -> FC -> ReLU -> FC ->
    # sigmoid -> per-channel scale).
    s = jnp.mean(x, axis=0, keepdims=True)
    s = jnp.maximum(jnp.dot(s, w1, preferred_element_type=jnp.float32) + b1, 0.0)
    s = jax.nn.sigmoid(jnp.dot(s, w2, preferred_element_type=jnp.float32) + b2)
    return x * s


def _make_kernel(dims):
    f_in, h1, h2, r1, r2 = dims
    rows, _ = _row_layout(f_in, h1, h2, r1, r2)

    def kernel(x_ref, adj_ref, w_ref, v_ref, out_ref):
        x = x_ref[...]
        mask = adj_ref[...] > 0                     # shared by both layers

        # ---- static views into the packed slabs (all offsets compile-time) ----
        W1aug = w_ref[rows["W1aug"]:rows["W1aug"] + f_in, 0:h1 + 2]
        W2aug = w_ref[rows["W2aug"]:rows["W2aug"] + h1, 0:h2 + 1]
        c1w1 = w_ref[rows["c1w1"]:rows["c1w1"] + h1, 0:r1]
        c1w2 = w_ref[rows["c1w2"]:rows["c1w2"] + r1, 0:h1]
        c2w1 = w_ref[rows["c2w1"]:rows["c2w1"] + h2, 0:r2]
        c2w2 = w_ref[rows["c2w2"]:rows["c2w2"] + r2, 0:h2]
        Wf = w_ref[rows["Wf"]:rows["Wf"] + h2, 0:1]

        b1 = v_ref[0:1, 0:h1]
        c1b1 = v_ref[1:2, 0:r1]
        c1b2 = v_ref[2:3, 0:h1]
        b2 = v_ref[3:4, 0:h2]
        c2b1 = v_ref[4:5, 0:r2]
        c2b2 = v_ref[5:6, 0:h2]
        brf = v_ref[6:7, 0:1]
        u_s1 = v_ref[7:8, 0:f_in]
        u_s2 = v_ref[8:9, 0:h1]

        # ---- layer 1: GATConv -> ReLU -> channel attention -------------------
        # one augmented matmul produces h, <h,att_dst>, and x @ (Wr @ Wf)
        ha = jnp.dot(x, W1aug, preferred_element_type=jnp.float32)    # [N, h1+2]
        a_d = ha[:, h1:h1 + 1]                                        # [N, 1]
        res = ha[:, h1 + 1:h1 + 2]                                    # [N, 1]
        a_s = lax.dot_general(u_s1, x, (((1,), (1,)), ((), ())),
                              preferred_element_type=jnp.float32)     # [1, N]
        g1 = _attend(mask, a_d, a_s, ha[:, 0:h1]) + b1
        g1 = jnp.maximum(g1, 0.0)
        g1 = _channel_attention(g1, c1w1, c1b1, c1w2, c1b2)

        # ---- layer 2: GATConv -> ReLU -> channel attention -------------------
        ha2 = jnp.dot(g1, W2aug, preferred_element_type=jnp.float32)  # [N, h2+1]
        a_d2 = ha2[:, h2:h2 + 1]
        a_s2 = lax.dot_general(u_s2, g1, (((1,), (1,)), ((), ())),
                               preferred_element_type=jnp.float32)    # [1, N]
        g2 = _attend(mask, a_d2, a_s2, ha2[:, 0:h2]) + b2
        g2 = jnp.maximum(g2, 0.0)
        g2 = _channel_attention(g2, c2w1, c2b1, c2w2, c2b2)

        # ---- fused residual + final linear + sigmoid --------------------------
        # (g2 + x@Wr + br) @ Wf + bf  ==  g2@Wf + x@(Wr@Wf) + (br@Wf + bf)
        y = jnp.dot(g2, Wf, preferred_element_type=jnp.float32) + res + brf
        out_ref[...] = jax.nn.sigmoid(y)

    return kernel


# --------------------------------------------------------------------------
# wrapper
# --------------------------------------------------------------------------
def residual_gat(x, adj, params):
    wslab, vslab, dims = pack_params(params)
    n = x.shape[0]
    vmem = pl.BlockSpec(memory_space=pltpu.MemorySpace.VMEM)
    return pl.pallas_call(
        _make_kernel(dims),
        out_shape=jax.ShapeDtypeStruct((n, 1), jnp.float32),
        in_specs=[vmem, vmem, vmem, vmem],
        out_specs=vmem,
    )(x, adj, wslab, vslab)


# --------------------------------------------------------------------------
# pure-JAX reference (mirrors the original unfused torch forward)
# --------------------------------------------------------------------------
def reference(x, adj, params):
    (W1, a1s, a1d, b1, c1w1, c1b1, c1w2, c1b2,
     W2, a2s, a2d, b2, c2w1, c2b1, c2w2, c2b2,
     Wr, br, Wf, bf) = params

    def gat(h_in, W, att_s, att_d, b):
        h = h_in @ W
        e = (h @ att_d.T) + (h @ att_s.T).T
        e = jnp.where(e > 0, e, NEG_SLOPE * e)
        e = jnp.where(adj > 0, e, -jnp.inf)
        alpha = jax.nn.softmax(e, axis=-1)
        return alpha @ h + b

    def ca(z, w1, bb1, w2, bb2):
        s = jnp.mean(z, axis=0, keepdims=True)
        s = jax.nn.relu(s @ w1 + bb1)
        s = jax.nn.sigmoid(s @ w2 + bb2)
        return z * s

    h = ca(jax.nn.relu(gat(x, W1, a1s, a1d, b1)), c1w1, c1b1, c1w2, c1b2)
    h = ca(jax.nn.relu(gat(h, W2, a2s, a2d, b2)), c2w1, c2b1, c2w2, c2b2)
    return jax.nn.sigmoid((h + (x @ Wr + br)) @ Wf + bf)


if __name__ == "__main__":
    key = jax.random.PRNGKey(0)
    N, F_IN = 16, 8          # data.num_features = 8
    H1, H2 = 32, 64          # GATConv output sizes
    R1, R2 = 8, 16           # SE reduction hidden sizes

    keys = jax.random.split(key, 16)

    def winit(k, shape, fan_in):
        return (jax.random.normal(k, shape, jnp.float32) /
                jnp.sqrt(fan_in)).astype(jnp.float32)

    # input node features
    x = jax.random.normal(keys[0], (N, F_IN), jnp.float32)

    # random edge_index -> dense adjacency adj[target, source], + self loops
    E = 48
    src = jax.random.randint(keys[1], (E,), 0, N)
    dst = jax.random.randint(keys[2], (E,), 0, N)
    adj = jnp.zeros((N, N), jnp.float32).at[dst, src].set(1.0)
    adj = adj.at[jnp.arange(N), jnp.arange(N)].set(1.0)

    params = (
        # conv1: lin weight (no bias), att_src, att_dst, conv bias
        winit(keys[3], (F_IN, H1), F_IN),
        winit(keys[4], (1, H1), H1),
        winit(keys[5], (1, H1), H1),
        jnp.zeros((1, H1), jnp.float32),
        # channel_attention1 (SE): fc1, b1, fc2, b2
        winit(keys[6], (H1, R1), H1),
        jnp.zeros((1, R1), jnp.float32),
        winit(keys[7], (R1, H1), R1),
        jnp.zeros((1, H1), jnp.float32),
        # conv2
        winit(keys[8], (H1, H2), H1),
        winit(keys[9], (1, H2), H2),
        winit(keys[10], (1, H2), H2),
        jnp.zeros((1, H2), jnp.float32),
        # channel_attention2
        winit(keys[11], (H2, R2), H2),
        jnp.zeros((1, R2), jnp.float32),
        winit(keys[12], (R2, H2), R2),
        jnp.zeros((1, H2), jnp.float32),
        # res_fc: Linear(F_IN, 64)
        winit(keys[13], (F_IN, H2), F_IN),
        jnp.zeros((1, H2), jnp.float32),
        # fc: Linear(64, 1)
        winit(keys[14], (H2, 1), H2),
        jnp.zeros((1, 1), jnp.float32),
    )

    out = jax.block_until_ready(residual_gat(x, adj, params))
    ref = reference(x, adj, params)

    assert out.shape == (N, 1)
    assert bool(jnp.all(jnp.isfinite(out)))
    assert bool(jnp.all((out >= 0.0) & (out <= 1.0)))
    assert bool(jnp.allclose(out, ref, atol=5e-3, rtol=5e-3)), \
        float(jnp.max(jnp.abs(out - ref)))
    print("KERNEL_OK")
</pallas_src>

<mosaic_0001>
module attributes {stable_mosaic.version = 11 : i64} {
  func.func @kernel(%arg0: memref<16x8xf32, #tpu.memory_space<vmem>>, %arg1: memref<16x16xf32, #tpu.memory_space<vmem>>, %arg2: memref<224x128xf32, #tpu.memory_space<vmem>>, %arg3: memref<16x128xf32, #tpu.memory_space<vmem>>, %arg4: memref<16x1xf32, #tpu.memory_space<vmem>>) attributes {dimension_semantics = [], scalar_prefetch = 0 : i64, scratch_operands = 0 : i64, tpu.core_type = #tpu.core_type<tc>} {
    %c0 = arith.constant 0 : index
    %c0_0 = arith.constant 0 : index
    %0 = vector.load %arg0[%c0, %c0_0] : memref<16x8xf32, #tpu.memory_space<vmem>>, vector<16x8xf32>
    %c0_1 = arith.constant 0 : index
    %c0_2 = arith.constant 0 : index
    %1 = vector.load %arg1[%c0_1, %c0_2] : memref<16x16xf32, #tpu.memory_space<vmem>>, vector<16x16xf32>
    %cst = arith.constant 0.000000e+00 : f32
    %2 = vector.broadcast %cst : f32 to vector<16x16xf32>
    %3 = arith.cmpf ogt, %1, %2 : vector<16x16xf32>
    %c0_3 = arith.constant 0 : index
    %c0_4 = arith.constant 0 : index
    %4 = vector.load %arg2[%c0_3, %c0_4] : memref<224x128xf32, #tpu.memory_space<vmem>>, vector<8x34xf32>
    %c8 = arith.constant 8 : index
    %c0_5 = arith.constant 0 : index
    %5 = vector.load %arg2[%c8, %c0_5] : memref<224x128xf32, #tpu.memory_space<vmem>>, vector<32x65xf32>
    %c40 = arith.constant 40 : index
    %c0_6 = arith.constant 0 : index
    %6 = vector.load %arg2[%c40, %c0_6] : memref<224x128xf32, #tpu.memory_space<vmem>>, vector<32x8xf32>
    %c72 = arith.constant 72 : index
    %c0_7 = arith.constant 0 : index
    %7 = vector.load %arg2[%c72, %c0_7] : memref<224x128xf32, #tpu.memory_space<vmem>>, vector<8x32xf32>
    %c80 = arith.constant 80 : index
    %c0_8 = arith.constant 0 : index
    %8 = vector.load %arg2[%c80, %c0_8] : memref<224x128xf32, #tpu.memory_space<vmem>>, vector<64x16xf32>
    %c144 = arith.constant 144 : index
    %c0_9 = arith.constant 0 : index
    %9 = vector.load %arg2[%c144, %c0_9] : memref<224x128xf32, #tpu.memory_space<vmem>>, vector<16x64xf32>
    %c160 = arith.constant 160 : index
    %c0_10 = arith.constant 0 : index
    %10 = vector.load %arg2[%c160, %c0_10] : memref<224x128xf32, #tpu.memory_space<vmem>>, vector<64x1xf32>
    %c0_11 = arith.constant 0 : index
    %c0_12 = arith.constant 0 : index
    %11 = vector.load %arg3[%c0_11, %c0_12] : memref<16x128xf32, #tpu.memory_space<vmem>>, vector<1x32xf32>
    %c1 = arith.constant 1 : index
    %c0_13 = arith.constant 0 : index
    %12 = vector.load %arg3[%c1, %c0_13] : memref<16x128xf32, #tpu.memory_space<vmem>>, vector<1x8xf32>
    %c2 = arith.constant 2 : index
    %c0_14 = arith.constant 0 : index
    %13 = vector.load %arg3[%c2, %c0_14] : memref<16x128xf32, #tpu.memory_space<vmem>>, vector<1x32xf32>
    %c3 = arith.constant 3 : index
    %c0_15 = arith.constant 0 : index
    %14 = vector.load %arg3[%c3, %c0_15] : memref<16x128xf32, #tpu.memory_space<vmem>>, vector<1x64xf32>
    %c4 = arith.constant 4 : index
    %c0_16 = arith.constant 0 : index
    %15 = vector.load %arg3[%c4, %c0_16] : memref<16x128xf32, #tpu.memory_space<vmem>>, vector<1x16xf32>
    %c5 = arith.constant 5 : index
    %c0_17 = arith.constant 0 : index
    %16 = vector.load %arg3[%c5, %c0_17] : memref<16x128xf32, #tpu.memory_space<vmem>>, vector<1x64xf32>
    %c6 = arith.constant 6 : index
    %c0_18 = arith.constant 0 : index
    %17 = vector.load %arg3[%c6, %c0_18] : memref<16x128xf32, #tpu.memory_space<vmem>>, vector<1x1xf32>
    %c7 = arith.constant 7 : index
    %c0_19 = arith.constant 0 : index
    %18 = vector.load %arg3[%c7, %c0_19] : memref<16x128xf32, #tpu.memory_space<vmem>>, vector<1x8xf32>
    %c8_20 = arith.constant 8 : index
    %c0_21 = arith.constant 0 : index
    %19 = vector.load %arg3[%c8_20, %c0_21] : memref<16x128xf32, #tpu.memory_space<vmem>>, vector<1x32xf32>
    %cst_22 = arith.constant dense<0.000000e+00> : vector<16x34xf32>
    %20 = tpu.matmul %0, %4, %cst_22 {dimension_numbers = #tpu.dot_dimension_numbers<[1], [0], [0], [1], [0, 0, 1, 1], [], []>} : vector<16x8xf32>, vector<8x34xf32>, vector<16x34xf32> -> vector<16x34xf32>
    %21 = vector.extract_strided_slice %20 {offsets = [0, 32], sizes = [16, 1], strides = [1, 1]} : vector<16x34xf32> to vector<16x1xf32>
    %22 = vector.extract_strided_slice %20 {offsets = [0, 33], sizes = [16, 1], strides = [1, 1]} : vector<16x34xf32> to vector<16x1xf32>
    %cst_23 = arith.constant dense<0.000000e+00> : vector<1x16xf32>
    %23 = tpu.matmul %18, %0, %cst_23 {dimension_numbers = #tpu.dot_dimension_numbers<[1], [1], [0], [0], [0, 0, 1, 0], [], []>} : vector<1x8xf32>, vector<16x8xf32>, vector<1x16xf32> -> vector<1x16xf32>
    %24 = vector.extract_strided_slice %20 {offsets = [0, 0], sizes = [16, 32], strides = [1, 1]} : vector<16x34xf32> to vector<16x32xf32>
    %25 = vector.broadcast %21 : vector<16x1xf32> to vector<16x16xf32>
    %26 = vector.broadcast %23 : vector<1x16xf32> to vector<16x16xf32>
    %27 = arith.addf %25, %26 : vector<16x16xf32>
    %cst_24 = arith.constant 0.000000e+00 : f32
    %28 = vector.broadcast %cst_24 : f32 to vector<16x16xf32>
    %29 = arith.cmpf ogt, %27, %28 : vector<16x16xf32>
    %cst_25 = arith.constant 2.000000e-01 : f32
    %30 = vector.broadcast %cst_25 : f32 to vector<16x16xf32>
    %31 = arith.mulf %30, %27 : vector<16x16xf32>
    %32 = arith.select %29, %27, %31 : vector<16x16xi1>, vector<16x16xf32>
    %cst_26 = arith.constant -1.000000e+30 : f32
    %33 = vector.broadcast %cst_26 : f32 to vector<16x16xf32>
    %34 = arith.select %3, %32, %33 : vector<16x16xi1>, vector<16x16xf32>
    %cst_27 = arith.constant dense<0xFF800000> : vector<16xf32>
    %35 = vector.multi_reduction <maximumf>, %34, %cst_27 [1] : vector<16x16xf32> to vector<16xf32>
    %36 = vector.shape_cast %35 : vector<16xf32> to vector<16x1xf32>
    %37 = vector.broadcast %36 : vector<16x1xf32> to vector<16x16xf32>
    %38 = arith.subf %34, %37 : vector<16x16xf32>
    %39 = math.exp %38 : vector<16x16xf32>
    %cst_28 = arith.constant dense<0.000000e+00> : vector<16xf32>
    %40 = vector.multi_reduction <add>, %39, %cst_28 [1] : vector<16x16xf32> to vector<16xf32>
    %41 = vector.shape_cast %40 : vector<16xf32> to vector<16x1xf32>
    %42 = tpu.reciprocal %41 {approx = true} : vector<16x1xf32> -> vector<16x1xf32>
    %43 = vector.broadcast %42 : vector<16x1xf32> to vector<16x16xf32>
    %44 = arith.mulf %39, %43 : vector<16x16xf32>
    %cst_29 = arith.constant dense<0.000000e+00> : vector<16x32xf32>
    %45 = tpu.matmul %44, %24, %cst_29 {dimension_numbers = #tpu.dot_dimension_numbers<[1], [0], [0], [1], [0, 0, 1, 1], [], []>} : vector<16x16xf32>, vector<16x32xf32>, vector<16x32xf32> -> vector<16x32xf32>
    %46 = vector.broadcast %11 : vector<1x32xf32> to vector<16x32xf32>
    %47 = arith.addf %45, %46 : vector<16x32xf32>
    %cst_30 = arith.constant 0.000000e+00 : f32
    %48 = vector.broadcast %cst_30 : f32 to vector<16x32xf32>
    %49 = arith.maximumf %47, %48 : vector<16x32xf32>
    %cst_31 = arith.constant dense<0.000000e+00> : vector<32xf32>
    %50 = vector.multi_reduction <add>, %49, %cst_31 [0] : vector<16x32xf32> to vector<32xf32>
    %51 = vector.shape_cast %50 : vector<32xf32> to vector<1x32xf32>
    %cst_32 = arith.constant 1.600000e+01 : f32
    %52 = vector.broadcast %cst_32 : f32 to vector<1x32xf32>
    %53 = arith.divf %51, %52 : vector<1x32xf32>
    %cst_33 = arith.constant dense<0.000000e+00> : vector<1x8xf32>
    %54 = tpu.matmul %53, %6, %cst_33 {dimension_numbers = #tpu.dot_dimension_numbers<[1], [0], [0], [1], [0, 0, 1, 1], [], []>} : vector<1x32xf32>, vector<32x8xf32>, vector<1x8xf32> -> vector<1x8xf32>
    %55 = arith.addf %54, %12 : vector<1x8xf32>
    %cst_34 = arith.constant 0.000000e+00 : f32
    %56 = vector.broadcast %cst_34 : f32 to vector<1x8xf32>
    %57 = arith.maximumf %55, %56 : vector<1x8xf32>
    %cst_35 = arith.constant dense<0.000000e+00> : vector<1x32xf32>
    %58 = tpu.matmul %57, %7, %cst_35 {dimension_numbers = #tpu.dot_dimension_numbers<[1], [0], [0], [1], [0, 0, 1, 1], [], []>} : vector<1x8xf32>, vector<8x32xf32>, vector<1x32xf32> -> vector<1x32xf32>
    %59 = arith.addf %58, %13 : vector<1x32xf32>
    %60 = arith.negf %59 : vector<1x32xf32>
    %61 = math.exp %60 : vector<1x32xf32>
    %cst_36 = arith.constant 1.000000e+00 : f32
    %62 = vector.broadcast %cst_36 : f32 to vector<1x32xf32>
    %63 = arith.addf %62, %61 : vector<1x32xf32>
    %64 = arith.divf %62, %63 : vector<1x32xf32>
    %65 = vector.broadcast %64 : vector<1x32xf32> to vector<16x32xf32>
    %66 = arith.mulf %49, %65 : vector<16x32xf32>
    %cst_37 = arith.constant dense<0.000000e+00> : vector<16x65xf32>
    %67 = tpu.matmul %66, %5, %cst_37 {dimension_numbers = #tpu.dot_dimension_numbers<[1], [0], [0], [1], [0, 0, 1, 1], [], []>} : vector<16x32xf32>, vector<32x65xf32>, vector<16x65xf32> -> vector<16x65xf32>
    %68 = vector.extract_strided_slice %67 {offsets = [0, 64], sizes = [16, 1], strides = [1, 1]} : vector<16x65xf32> to vector<16x1xf32>
    %cst_38 = arith.constant dense<0.000000e+00> : vector<1x16xf32>
    %69 = tpu.matmul %19, %66, %cst_38 {dimension_numbers = #tpu.dot_dimension_numbers<[1], [1], [0], [0], [0, 0, 1, 0], [], []>} : vector<1x32xf32>, vector<16x32xf32>, vector<1x16xf32> -> vector<1x16xf32>
    %70 = vector.extract_strided_slice %67 {offsets = [0, 0], sizes = [16, 64], strides = [1, 1]} : vector<16x65xf32> to vector<16x64xf32>
    %71 = vector.broadcast %68 : vector<16x1xf32> to vector<16x16xf32>
    %72 = vector.broadcast %69 : vector<1x16xf32> to vector<16x16xf32>
    %73 = arith.addf %71, %72 : vector<16x16xf32>
    %cst_39 = arith.constant 0.000000e+00 : f32
    %74 = vector.broadcast %cst_39 : f32 to vector<16x16xf32>
    %75 = arith.cmpf ogt, %73, %74 : vector<16x16xf32>
    %cst_40 = arith.constant 2.000000e-01 : f32
    %76 = vector.broadcast %cst_40 : f32 to vector<16x16xf32>
    %77 = arith.mulf %76, %73 : vector<16x16xf32>
    %78 = arith.select %75, %73, %77 : vector<16x16xi1>, vector<16x16xf32>
    %cst_41 = arith.constant -1.000000e+30 : f32
    %79 = vector.broadcast %cst_41 : f32 to vector<16x16xf32>
    %80 = arith.select %3, %78, %79 : vector<16x16xi1>, vector<16x16xf32>
    %cst_42 = arith.constant dense<0xFF800000> : vector<16xf32>
    %81 = vector.multi_reduction <maximumf>, %80, %cst_42 [1] : vector<16x16xf32> to vector<16xf32>
    %82 = vector.shape_cast %81 : vector<16xf32> to vector<16x1xf32>
    %83 = vector.broadcast %82 : vector<16x1xf32> to vector<16x16xf32>
    %84 = arith.subf %80, %83 : vector<16x16xf32>
    %85 = math.exp %84 : vector<16x16xf32>
    %cst_43 = arith.constant dense<0.000000e+00> : vector<16xf32>
    %86 = vector.multi_reduction <add>, %85, %cst_43 [1] : vector<16x16xf32> to vector<16xf32>
    %87 = vector.shape_cast %86 : vector<16xf32> to vector<16x1xf32>
    %88 = tpu.reciprocal %87 {approx = true} : vector<16x1xf32> -> vector<16x1xf32>
    %89 = vector.broadcast %88 : vector<16x1xf32> to vector<16x16xf32>
    %90 = arith.mulf %85, %89 : vector<16x16xf32>
    %cst_44 = arith.constant dense<0.000000e+00> : vector<16x64xf32>
    %91 = tpu.matmul %90, %70, %cst_44 {dimension_numbers = #tpu.dot_dimension_numbers<[1], [0], [0], [1], [0, 0, 1, 1], [], []>} : vector<16x16xf32>, vector<16x64xf32>, vector<16x64xf32> -> vector<16x64xf32>
    %92 = vector.broadcast %14 : vector<1x64xf32> to vector<16x64xf32>
    %93 = arith.addf %91, %92 : vector<16x64xf32>
    %cst_45 = arith.constant 0.000000e+00 : f32
    %94 = vector.broadcast %cst_45 : f32 to vector<16x64xf32>
    %95 = arith.maximumf %93, %94 : vector<16x64xf32>
    %cst_46 = arith.constant dense<0.000000e+00> : vector<64xf32>
    %96 = vector.multi_reduction <add>, %95, %cst_46 [0] : vector<16x64xf32> to vector<64xf32>
    %97 = vector.shape_cast %96 : vector<64xf32> to vector<1x64xf32>
    %cst_47 = arith.constant 1.600000e+01 : f32
    %98 = vector.broadcast %cst_47 : f32 to vector<1x64xf32>
    %99 = arith.divf %97, %98 : vector<1x64xf32>
    %cst_48 = arith.constant dense<0.000000e+00> : vector<1x16xf32>
    %100 = tpu.matmul %99, %8, %cst_48 {dimension_numbers = #tpu.dot_dimension_numbers<[1], [0], [0], [1], [0, 0, 1, 1], [], []>} : vector<1x64xf32>, vector<64x16xf32>, vector<1x16xf32> -> vector<1x16xf32>
    %101 = arith.addf %100, %15 : vector<1x16xf32>
    %cst_49 = arith.constant 0.000000e+00 : f32
    %102 = vector.broadcast %cst_49 : f32 to vector<1x16xf32>
    %103 = arith.maximumf %101, %102 : vector<1x16xf32>
    %cst_50 = arith.constant dense<0.000000e+00> : vector<1x64xf32>
    %104 = tpu.matmul %103, %9, %cst_50 {dimension_numbers = #tpu.dot_dimension_numbers<[1], [0], [0], [1], [0, 0, 1, 1], [], []>} : vector<1x16xf32>, vector<16x64xf32>, vector<1x64xf32> -> vector<1x64xf32>
    %105 = arith.addf %104, %16 : vector<1x64xf32>
    %106 = arith.negf %105 : vector<1x64xf32>
    %107 = math.exp %106 : vector<1x64xf32>
    %cst_51 = arith.constant 1.000000e+00 : f32
    %108 = vector.broadcast %cst_51 : f32 to vector<1x64xf32>
    %109 = arith.addf %108, %107 : vector<1x64xf32>
    %110 = arith.divf %108, %109 : vector<1x64xf32>
    %111 = vector.broadcast %110 : vector<1x64xf32> to vector<16x64xf32>
    %112 = arith.mulf %95, %111 : vector<16x64xf32>
    %cst_52 = arith.constant dense<0.000000e+00> : vector<16x1xf32>
    %113 = tpu.matmul %112, %10, %cst_52 {dimension_numbers = #tpu.dot_dimension_numbers<[1], [0], [0], [1], [0, 0, 1, 1], [], []>} : vector<16x64xf32>, vector<64x1xf32>, vector<16x1xf32> -> vector<16x1xf32>
    %114 = arith.addf %113, %22 : vector<16x1xf32>
    %115 = vector.broadcast %17 : vector<1x1xf32> to vector<16x1xf32>
    %116 = arith.addf %114, %115 : vector<16x1xf32>
    %117 = arith.negf %116 : vector<16x1xf32>
    %118 = math.exp %117 : vector<16x1xf32>
    %cst_53 = arith.constant 1.000000e+00 : f32
    %119 = vector.broadcast %cst_53 : f32 to vector<16x1xf32>
    %120 = arith.addf %119, %118 : vector<16x1xf32>
    %121 = arith.divf %119, %120 : vector<16x1xf32>
    %c0_54 = arith.constant 0 : index
    %c0_55 = arith.constant 0 : index
    %122 = vector.load %arg4[%c0_54, %c0_55] : memref<16x1xf32, #tpu.memory_space<vmem>>, vector<16x1xf32>
    tpu.vector_store %arg4[%c0_54, %c0_55], %121 {strides = array<i32>} : memref<16x1xf32, #tpu.memory_space<vmem>>, vector<16x1xf32>,
    return
  }
}

</mosaic_0001>

<bundles_post_ra>
// kernel: tpu_custom_call.1
= control target key start
LH: loop header
LB: loop body
LE: loop exit
PB: predicated region body
PF: predicated region fallthrough
CT: control target
= control target key end

     0   :  { %9 = vsyncpa [#allocation3], 0  ;;  %s854_s0 = inlined_call_operand.vmem [shape: f32[16,8], index: 0, kind: input, shape index: {}]   ;;  %s855_s1 = inlined_call_operand.vmem [shape: f32[16,16], index: 1, kind: input, shape index: {}]   ;;  %s856_s2 = inlined_call_operand.hbm [shape: f32[224,128], index: 2, kind: input, shape index: {}]   ;;  %s857_s3 = inlined_call_operand.hbm [shape: f32[16,128], index: 3, kind: input, shape index: {}]   ;;  %s858_s4 = inlined_call_operand.vmem [shape: f32[16,1], index: 4, kind: output, shape index: {}]  }
   0x1   :  { %s19_s17 = sshll.u32 %s856_s2, 4  ;;  %s20_s17 = int_to_ptr.hbm [resolvable:$true] %s19_s17 }
   0x2   :  { %10 = vsyncpa [#allocation5], 0  ;;  %s724_s18 = smov [#allocation2]   ;;  %s32_s22 = sshll.u32 %s857_s3, 4  ;;  %s33_s22 = int_to_ptr.hbm [resolvable:$true] %s32_s22 }
   0x3   :  { %s21_s19 = sshll.u32 %s724_s18, 4  ;;  %s725_s23 = smov 128   ;;  %s22_s19 = int_to_ptr.vmem [resolvable:$true] %s21_s19 }
   0x4   :  { %s726_s24 = smov 8   ;;  %s727_s25 = smov [#allocation4]  }
   0x5   :  { %27 = dma.hbm_to_vmem [thread:$0]  %s20_s17, 3584, %s22_s19, [#allocation3], %s725_s23, %s725_s23, %s726_s24  }
   0x6   :  { %s34_s26 = sshll.u32 %s727_s25, 4  ;;  %s35_s26 = int_to_ptr.vmem [resolvable:$true] %s34_s26 }
   0x7   :  { %40 = dma.hbm_to_vmem [thread:$0]  %s33_s22, 256, %s35_s26, [#allocation5], %s725_s23, %s725_s23, %s726_s24  }
   0x8   :  { %720 = dma.done.wait [#allocation3], 3584  }
   0x9   :  { %721 = vsyncadd [#allocation3], 4294963712 }
   0xa   :  { %722 = dma.done.wait [#allocation5], 256  }
   0xb   :  { %723 = vsyncadd [#allocation5], 4294967040  ;;  %v728_v0 = vmov 32   ;;  %vm92_vm0 = vcmask 64512   ;;  %v55_v1 = vld [vmem:[#allocation2] sm:$0xff]  ;;  %v50_v3 = vld [vmem:[%s854_s0 + $0x8] sm:$0xff] }
   0xc   :  { %632 = vset.pattern.permute.xlu0 %v728_v0  ;;  %v49_v2 = vld [vmem:[%s854_s0] sm:$0xff]  ;;  %114 = vmatpush.msra.mxu0 %v55_v1  ;;  %vm166_vm3 = vcmask 130048   ;;  %v794_v17 = vld [vmem:[%s855_s1 + $0x8] sm:$0xff]  ;;  %v62_v40 = vld [vmem:[#allocation2 + $0x38] sm:$0xff]  ;;  %v729_v45 = vmov 16.0   ;;  %vm221_vm6 = vcmask 261120  }
   0xd   :  { %602 = vmatpush.xpose.msk.msra.mxu1 %vm92_vm0, %v50_v3  ;;  %600 = vmatmul.msk.f32.vlgmr.msra.gmra.mxu0 %vm92_vm0, %v49_v2  ;;  %v90_v4 = vld [vmem:[#allocation4 + $0x7] sm:$0x1]  ;;  %vm54_vm4 = vcmp.gt.f32.partialorder %v794_v17, 0.0  ;;  %v61_v41 = vld [vmem:[#allocation2 + $0x30] sm:$0xff]  ;;  %v60_v42 = vld [vmem:[#allocation2 + $0x28] sm:$0xff]  ;;  %vm435_vm14 = vcmask 523264  }
   0xe   :  { %v785_v10 = vld [vmem:[%s855_s1] sm:$0xff]  ;;  %v64_v43 = vld [vmem:[#allocation2 + $0x48] sm:$0xff]  ;;  %s731_s1 = smov 95  }
   0xf   :  { %vm53_vm1 = vcmp.gt.f32.partialorder %v785_v10, 0.0  ;;  %v63_v39 = vld [vmem:[#allocation2 + $0x40] sm:$0xff] }
  0x10   :  { %254 = vmatpush.msrb.mxu0 %v63_v39  ;;  %v635_v46 = vld [vmem:[#allocation4] ss:$0 sm:$0xff] }
  0x11   :  { %603 = vmatpush.xpose.msk.msra.mxu1 %vm92_vm0, %v49_v2 }
  0x12   :  { %255 = vmatpush.msrb.mxu0 %v62_v40 }
  0x14   :  { %604 = vmatmul.msk.f32.vlgmr.msra.gmra.mxu1 %vm92_vm0, %v90_v4  ;;  %256 = vmatpush.msrb.mxu0 %v61_v41  ;;  %v84_v4 = vld [vmem:[#allocation4 + $0x1] sm:$0x1] }
  0x15   :  { %601 = vmatmul.msk.f32.gmra.mxu0 %vm92_vm0, %v50_v3  ;;  %281 = vmatpush.msrb.mxu1 %v64_v43 }
  0x16   :  { %257 = vmatpush.msrb.mxu0 %v60_v42 }
  0x8a   :  { %v774_v5 = vpop.f32.mrf.mxu0 }
  0x8b   :  { %147 = vperm.xlu0 %632, %v774_v5  }
  0x91   :  { %v142_v7 = vpop.f32.mrf.mxu1 }
  0x92   :  { %v777_v6 = vpop.f32.mrf.mxu0  ;;  %v155_v8 = vperm.slane %v142_v7, 0 }
  0x93   :  { %152 = vperm.xlu0 %632, %v777_v6   ;;  %210 = vmatpush.msra.mxu2 %v777_v6 }
  0x95   :  { %211 = vmatpush.msra.mxu2 %v774_v5 }
  0xfd   :  { %v148_v9 = vpop.permute.xlu0 %147 }
  0xfe   :  { %v156_v11 = vadd.f32 %v155_v8, %v148_v9 }
 0x100   :  { %v160_v12 = vmul.f32 0.2, %v156_v11  ;;  %vm158_vm2 = vcmp.gt.f32.partialorder %v156_v11, 0.0 }
 0x102   :  { %v162_v13 = vsel %vm158_vm2, %v156_v11, %v160_v12  ;;  %v59_v11 = vld [vmem:[#allocation2 + $0x20] sm:$0xff]  ;;  %v58_v12 = vld [vmem:[#allocation2 + $0x18] sm:$0xff] }
 0x103   :  { %v164_v14 = vsel %vm53_vm1, %v162_v13, -1e+30  ;;  %326 = vmatpush.msra.mxu3 %v59_v11  ;;  %v57_v13 = vld [vmem:[#allocation2 + $0x10] sm:$0xff]  ;;  %v66_v11 = vld [vmem:[#allocation2 + $0x58] sm:$0xff] }
 0x104   :  { %v167_v15 = vsel %vm166_vm3, %v164_v14, -inf }
 0x105   :  { %168 = vmax.xlane.f32.xlu1 %v167_v15  ;;  %v153_v16 = vpop.permute.xlu0 %152  ;;  %327 = vmatpush.msra.mxu3 %v58_v12  ;;  %v85_v15 = vld [vmem:[#allocation4 + $0x2] sm:$0x1]  ;;  %v65_v12 = vld [vmem:[#allocation2 + $0x50] sm:$0xff] }
 0x106   :  { %v157_v18 = vadd.f32 %v155_v8, %v153_v16 }
 0x107   :  { %328 = vmatpush.msra.mxu3 %v57_v13  ;;  %v74_v13 = vld [vmem:[#allocation2 + $0x98] sm:$0xff] }
 0x108   :  { %v161_v19 = vmul.f32 0.2, %v157_v18  ;;  %vm159_vm5 = vcmp.gt.f32.partialorder %v157_v18, 0.0 }
 0x10a   :  { %v163_v20 = vsel %vm159_vm5, %v157_v18, %v161_v19 }
 0x10b   :  { %v165_v21 = vsel %vm54_vm4, %v163_v20, -1e+30 }
 0x10c   :  { %v170_v22 = vsel %vm166_vm3, %v165_v21, -inf }
 0x10d   :  { %171 = vmax.xlane.f32.xlu1 %v170_v22  ;;  %v730_v22 = vmov 64  }
 0x10e   :  { %633 = vset.pattern.permute.xlu0 %v730_v22  ;;  %634 = vset.pattern.permute.xlu1 %v730_v22 }
 0x178   :  { %v169_v23 = vpop.xlane.xlu1 %168 }
 0x179   :  { %v173_v24 = vsub.f32 %v164_v14, %v169_v23  ;;  %v56_v14 = vld [vmem:[#allocation2 + $0x8] sm:$0xff] }
 0x17a   :  { %329 = vmatpush.msra.mxu3 %v56_v14 }
 0x17b   :  { %v175_v25 = vmul.f32 1.442695, %v173_v24 }
 0x17d   :  { %638 = vpow2.f32 %v175_v25 }
 0x180   :  { %v172_v26 = vpop.xlane.xlu1 %171 }
 0x181   :  { %v174_v27 = vsub.f32 %v165_v21, %v172_v26 }
 0x183   :  { %v639_v28 = vpop.eup %638  ;;  %v177_v29 = vmul.f32 1.442695, %v174_v27 }
 0x184   :  { %v179_v30 = vsel %vm166_vm3, %v639_v28, 0.0 }
 0x185   :  { %640 = vpow2.f32 %v177_v29  ;;  %180 = vadd.xlane.f32.xlu2 %v179_v30 }
 0x18b   :  { %v641_v31 = vpop.eup %640 }
 0x18c   :  { %v182_v32 = vsel %vm166_vm3, %v641_v31, 0.0 }
 0x18d   :  { %183 = vadd.xlane.f32.xlu2 %v182_v32 }
 0x1f8   :  { %v181_v33 = vpop.xlane.xlu2 %180 }
 0x1f9   :  { %642 = vrcp.f32 %v181_v33 }
 0x1ff   :  { %v643_v34 = vpop.eup %642 }
 0x200   :  { %v184_v35 = vpop.xlane.xlu2 %183  ;;  %v187_v36 = vmul.f32 %v643_v34, %v639_v28 }
 0x201   :  { %644 = vrcp.f32 %v184_v35 }
 0x202   :  { %605 = vmatmul.msk.f32.vlgmr.msra.gmra.mxu2 %vm166_vm3, %v187_v36  ;;  %646 = vrcp.f32 %v729_v45  ;;  %v91_v36 = vld [vmem:[#allocation4 + $0x8] sm:$0x1] }
 0x207   :  { %v645_v37 = vpop.eup %644 }
 0x208   :  { %v188_v38 = vmul.f32 %v645_v37, %v641_v31  ;;  %v647_v48 = vpop.eup %646 }
 0x209   :  { %v232_v52 = vmul.f32 16.0, %v647_v48  ;;  %vm236_vm7 = vweird.f32 %v647_v48 }
 0x20a   :  { %606 = vmatmul.msk.f32.gmra.mxu2 %vm166_vm3, %v188_v38 }
 0x20b   :  { %v233_v56 = vsub.f32 1.0, %v232_v52 }
 0x20d   :  { %v234_v59 = vmul.f32 %v647_v48, %v233_v56 }
 0x20f   :  { %v235_v62 = vadd.f32 %v647_v48, %v234_v59 }
 0x211   :  { %v809_v1 = vsel %vm236_vm7, %v647_v48, %v235_v62 }
 0x285   :  { %v213_v44 = vpop.f32.mrf.mxu2 }
 0x286   :  { %v804_v47 = vadd.f32 %v635_v46, %v213_v44 }
 0x288   :  { %v219_v50 = vmax.f32 %v804_v47, 0.0 }
 0x28a   :  { %v222_v54 = vsel %vm221_vm6, %v219_v50, 0.0 }
 0x28d   :  { %v216_v49 = vpop.f32.mrf.mxu2 }
 0x28e   :  { %v217_v51 = vadd.f32 %v635_v46, %v216_v49 }
 0x290   :  { %v220_v53 = vmax.f32 %v217_v51, 0.0 }
 0x292   :  { %v223_v55 = vsel %vm221_vm6, %v220_v53, 0.0 }
 0x293   :  { %v224_v57 = vadd.f32 %v223_v55, %v222_v54 }
 0x295   :  { %v225_v58 = vrot.slane %v224_v57, 4 }
 0x297   :  { %v226_v60 = vadd.f32 %v225_v58, %v224_v57 }
 0x299   :  { %v227_v61 = vrot.slane %v226_v60, 2 }
 0x29b   :  { %v228_v63 = vadd.f32 %v227_v61, %v226_v60 }
 0x29d   :  { %v229_v0 = vrot.slane %v228_v63, 1 }
 0x29f   :  { %v230_v2 = vadd.f32 %v229_v0, %v228_v63 }
 0x2a1   :  { %v238_v3 = vmul.f32 %v809_v1, %v230_v2 }
 0x2a3   :  { %607 = vmatmul.msk.f32.vlgmr.msrb.gmra.mxu0 %vm221_vm6, %v238_v3  ;;  %v72_v3 = vld [vmem:[#allocation2 + $0x88] sm:$0xff] }
 0x2a4   :  { %457 = vmatpush.msra.mxu1 %v72_v3 }
 0x320   :  { %v259_v7 = vpop.f32.mrf.mxu0 }
 0x321   :  { %v260_v8 = vadd.f32 %v259_v7, %v84_v4  ;;  %v71_v4 = vld [vmem:[#allocation2 + $0x80] sm:$0xff]  ;;  %v70_v7 = vld [vmem:[#allocation2 + $0x78] sm:$0xff] }
 0x322   :  { %458 = vmatpush.msra.mxu1 %v71_v4 }
 0x323   :  { %v262_v9 = vmax.f32 %v260_v8, 0.0  ;;  %v69_v8 = vld [vmem:[#allocation2 + $0x70] sm:$0xff] }
 0x324   :  { %459 = vmatpush.msra.mxu1 %v70_v7 }
 0x325   :  { %608 = vmatmul.msk.f32.vlgmr.msrb.gmra.mxu1 %vm92_vm0, %v262_v9  ;;  %v67_v9 = vld [vmem:[#allocation2 + $0x60] sm:$0xff] }
 0x326   :  { %460 = vmatpush.msra.mxu1 %v69_v8 }
 0x3a2   :  { %v283_v16 = vpop.f32.mrf.mxu1 }
 0x3a3   :  { %v284_v18 = vadd.f32 %v283_v16, %v85_v15  ;;  %v636_v15 = vld [vmem:[#allocation4 + $0x3] ss:$0 sm:$0xff] }
 0x3a5   :  { %v609_v19 = vmul.f32 -1.442695, %v284_v18 }
 0x3a7   :  { %648 = vpow2.f32 %v609_v19 }
 0x3ad   :  { %v649_v20 = vpop.eup %648 }
 0x3ae   :  { %v289_v21 = vadd.f32 1.0, %v649_v20 }
 0x3b0   :  { %650 = vrcp.f32 %v289_v21  ;;  %v301_v26 = vand.u32 2147483648, %v289_v21  ;;  %v299_v28 = vand.u32 2147483647, %v289_v21  ;;  %vm295_vm9 = vweird.f32 %v289_v21 }
 0x3b2   :  { %v302_v30 = vor.u32 1.1754944e-38, %v301_v26  ;;  %vm300_vm11 = vcmp.eq.f32.partialorder %v299_v28, 8.507059e+37 }
 0x3b6   :  { %v651_v23 = vpop.eup %650 }
 0x3b7   :  { %v291_v24 = vmul.f32 %v651_v23, %v289_v21  ;;  %vm296_vm8 = vweird.f32 %v651_v23 }
 0x3b8   :  { %vm297_vm10 = vmor %vm295_vm9, %vm296_vm8 }
 0x3b9   :  { %v292_v25 = vsub.f32 1.0, %v291_v24 }
 0x3bb   :  { %v293_v27 = vmul.f32 %v651_v23, %v292_v25 }
 0x3bd   :  { %v294_v29 = vadd.f32 %v651_v23, %v293_v27 }
 0x3bf   :  { %v298_v31 = vsel %vm297_vm10, %v651_v23, %v294_v29 }
 0x3c0   :  { %v303_v32 = vsel %vm300_vm11, %v302_v30, %v298_v31 }
 0x3c1   :  { %v305_v33 = vperm.slane %v303_v32, 0  ;;  %v73_v32 = vld [vmem:[#allocation2 + $0x90] sm:$0xff] }
 0x3c3   :  { %v306_v34 = vmul.f32 %v305_v33, %v219_v50  ;;  %v307_v35 = vmul.f32 %v305_v33, %v220_v53  ;;  %v87_v33 = vld [vmem:[#allocation4 + $0x4] sm:$0x1] }
 0x3c5   :  { %610 = vmatmul.msk.f32.vlgmr.msra.gmra.mxu3 %vm221_vm6, %v306_v34  ;;  %612 = vmatpush.xpose.msk.msra.mxu0 %vm221_vm6, %v307_v35 }
 0x3c9   :  { %613 = vmatpush.xpose.msk.msra.mxu0 %vm221_vm6, %v306_v34 }
 0x3cc   :  { %614 = vmatmul.msk.f32.vlgmr.msra.gmra.mxu0 %vm221_vm6, %v91_v36 }
 0x3cd   :  { %611 = vmatmul.msk.f32.gmra.mxu3 %vm221_vm6, %v307_v35  ;;  %487 = vmatpush.msrb.mxu0 %v74_v13  ;;  %vm591_vm6 = vcmask 7168  }
 0x3cf   :  { %488 = vmatpush.msrb.mxu0 %v73_v32 }
 0x448   :  { %v331_v37 = vpop.f32.mrf.mxu3 }
 0x449   :  { %362 = vperm.xlu0 %633, %v331_v37   ;;  %v357_v39 = vpop.f32.mrf.mxu0 }
 0x44a   :  { %v370_v40 = vperm.slane %v357_v39, 0  ;;  %v80_v39 = vld [vmem:[#allocation2 + $0xc8] sm:$0xff] }
 0x450   :  { %v334_v38 = vpop.f32.mrf.mxu3 }
 0x451   :  { %367 = vperm.xlu1 %634, %v334_v38   ;;  %424 = vmatpush.msrb.mxu2 %v334_v38  ;;  %v81_v38 = vld [vmem:[#allocation2 + $0xd0] sm:$0xff] }
 0x453   :  { %425 = vmatpush.msrb.mxu2 %v331_v37  ;;  %v82_v37 = vld [vmem:[#allocation2 + $0xd8] sm:$0xff] }
 0x454   :  { %535 = vmatpush.msrb.mxu3 %v82_v37 }
 0x456   :  { %536 = vmatpush.msrb.mxu3 %v81_v38 }
 0x458   :  { %537 = vmatpush.msrb.mxu3 %v80_v39 }
 0x459   :  { %517 = vrot.lane.b32.xlu1 %v777_v6, %s731_s1 }
 0x4bb   :  { %v363_v41 = vpop.permute.xlu0 %362 }
 0x4bc   :  { %v371_v42 = vadd.f32 %v370_v40, %v363_v41  ;;  %v78_v41 = vld [vmem:[#allocation2 + $0xb8] sm:$0xff] }
 0x4be   :  { %v375_v43 = vmul.f32 0.2, %v371_v42  ;;  %vm373_vm12 = vcmp.gt.f32.partialorder %v371_v42, 0.0 }
 0x4c0   :  { %v377_v44 = vsel %vm373_vm12, %v371_v42, %v375_v43  ;;  %v76_v42 = vld [vmem:[#allocation2 + $0xa8] sm:$0xff]  ;;  %v88_v43 = vld [vmem:[#allocation4 + $0x5] sm:$0x1] }
 0x4c1   :  { %v379_v45 = vsel %vm53_vm1, %v377_v44, -1e+30  ;;  %v75_v44 = vld [vmem:[#allocation2 + $0xa0] sm:$0xff] }
 0x4c2   :  { %v381_v46 = vsel %vm166_vm3, %v379_v45, -inf }
 0x4c3   :  { %382 = vmax.xlane.f32.xlu2 %v381_v46  ;;  %v368_v47 = vpop.permute.xlu1 %367 }
 0x4c4   :  { %v372_v48 = vadd.f32 %v370_v40, %v368_v47  ;;  %v79_v40 = vld [vmem:[#allocation2 + $0xc0] sm:$0xff] }
 0x4c5   :  { %538 = vmatpush.msrb.mxu3 %v79_v40 }
 0x4c6   :  { %v376_v49 = vmul.f32 0.2, %v372_v48  ;;  %vm374_vm13 = vcmp.gt.f32.partialorder %v372_v48, 0.0 }
 0x4c7   :  { %539 = vmatpush.msrb.mxu3 %v78_v41 }
 0x4c8   :  { %v378_v50 = vsel %vm374_vm13, %v372_v48, %v376_v49 }
 0x4c9   :  { %v380_v6 = vsel %vm54_vm4, %v378_v50, -1e+30 }
 0x4ca   :  { %v384_v51 = vsel %vm166_vm3, %v380_v6, -inf }
 0x4cb   :  { %385 = vmax.xlane.f32.xlu2 %v384_v51  ;;  %v518_v3 = vpop.permute.xlu1 %517 }
 0x536   :  { %v383_v52 = vpop.xlane.xlu2 %382 }
 0x537   :  { %v387_v53 = vsub.f32 %v379_v45, %v383_v52 }
 0x539   :  { %v389_v54 = vmul.f32 1.442695, %v387_v53 }
 0x53b   :  { %652 = vpow2.f32 %v389_v54 }
 0x53e   :  { %v386_v10 = vpop.xlane.xlu2 %385 }
 0x53f   :  { %v388_v55 = vsub.f32 %v380_v6, %v386_v10 }
 0x541   :  { %v653_v56 = vpop.eup %652  ;;  %v391_v57 = vmul.f32 1.442695, %v388_v55 }
 0x542   :  { %v393_v58 = vsel %vm166_vm3, %v653_v56, 0.0 }
 0x543   :  { %654 = vpow2.f32 %v391_v57  ;;  %394 = vadd.xlane.f32.xlu0 %v393_v58 }
 0x549   :  { %v655_v59 = vpop.eup %654 }
 0x54a   :  { %v396_v60 = vsel %vm166_vm3, %v655_v59, 0.0 }
 0x54b   :  { %397 = vadd.xlane.f32.xlu2 %v396_v60 }
 0x563   :  { %515 = vrot.lane.b32.xlu2 %v774_v5, %s731_s1  ;;  %v68_v5 = vld [vmem:[#allocation2 + $0x68] sm:$0xff] }
 0x564   :  { %461 = vmatpush.msra.mxu1 %v68_v5 }
 0x566   :  { %462 = vmatpush.msra.mxu1 %v67_v9 }
 0x568   :  { %463 = vmatpush.msra.mxu1 %v66_v11 }
 0x56a   :  { %464 = vmatpush.msra.mxu1 %v65_v12 }
 0x5b6   :  { %v395_v17 = vpop.xlane.xlu0 %394 }
 0x5b7   :  { %656 = vrcp.f32 %v395_v17  ;;  %v637_v17 = vld [vmem:[#allocation4 + $0x6] ss:$0 sm:$0xff] }
 0x5bd   :  { %v657_v61 = vpop.eup %656 }
 0x5be   :  { %v401_v62 = vmul.f32 %v657_v61, %v653_v56  ;;  %v398_v63 = vpop.xlane.xlu2 %397 }
 0x5bf   :  { %658 = vrcp.f32 %v398_v63 }
 0x5c0   :  { %615 = vmatmul.msk.f32.vlgmr.msrb.gmra.mxu2 %vm166_vm3, %v401_v62 }
 0x5c5   :  { %v659_v0 = vpop.eup %658 }
 0x5c6   :  { %v402_v2 = vmul.f32 %v659_v0, %v655_v59  ;;  %v516_v61 = vpop.permute.xlu2 %515 }
 0x5c8   :  { %616 = vmatmul.msk.f32.gmra.mxu2 %vm166_vm3, %v402_v2 }
 0x643   :  { %v427_v14 = vpop.f32.mrf.mxu2 }
 0x644   :  { %v833_v16 = vadd.f32 %v636_v15, %v427_v14 }
 0x646   :  { %v433_v19 = vmax.f32 %v833_v16, 0.0 }
 0x648   :  { %v436_v22 = vsel %vm435_vm14, %v433_v19, 0.0 }
 0x64b   :  { %v430_v18 = vpop.f32.mrf.mxu2 }
 0x64c   :  { %v836_v20 = vadd.f32 %v636_v15, %v430_v18 }
 0x64e   :  { %v434_v21 = vmax.f32 %v836_v20, 0.0 }
 0x650   :  { %v437_v23 = vsel %vm435_vm14, %v434_v21, 0.0 }
 0x651   :  { %v438_v24 = vadd.f32 %v437_v23, %v436_v22 }
 0x653   :  { %v439_v25 = vrot.slane %v438_v24, 4 }
 0x655   :  { %v440_v26 = vadd.f32 %v439_v25, %v438_v24 }
 0x657   :  { %v441_v27 = vrot.slane %v440_v26, 2 }
 0x659   :  { %v442_v28 = vadd.f32 %v441_v27, %v440_v26 }
 0x65b   :  { %v443_v29 = vrot.slane %v442_v28, 1 }
 0x65d   :  { %v444_v30 = vadd.f32 %v443_v29, %v442_v28 }
 0x65f   :  { %v445_v31 = vmul.f32 %v444_v30, %v809_v1  ;;  %v77_v1 = vld [vmem:[#allocation2 + $0xb0] sm:$0xff] }
 0x660   :  { %540 = vmatpush.msrb.mxu3 %v77_v1 }
 0x661   :  { %617 = vmatmul.msk.f32.vlgmr.msra.gmra.mxu1 %vm435_vm14, %v445_v31 }
 0x662   :  { %541 = vmatpush.msrb.mxu3 %v76_v42 }
 0x664   :  { %542 = vmatpush.msrb.mxu3 %v75_v44 }
 0x6de   :  { %v466_v34 = vpop.f32.mrf.mxu1 }
 0x6df   :  { %v467_v35 = vadd.f32 %v466_v34, %v87_v33 }
 0x6e1   :  { %v469_v36 = vmax.f32 %v467_v35, 0.0 }
 0x6e3   :  { %618 = vmatmul.msk.f32.vlgmr.msrb.gmra.mxu0 %vm166_vm3, %v469_v36 }
 0x760   :  { %v490_v45 = vpop.f32.mrf.mxu0 }
 0x761   :  { %v491_v46 = vadd.f32 %v490_v45, %v88_v43 }
 0x763   :  { %v619_v47 = vmul.f32 -1.442695, %v491_v46 }
 0x765   :  { %660 = vpow2.f32 %v619_v47 }
 0x76b   :  { %v661_v48 = vpop.eup %660 }
 0x76c   :  { %v496_v49 = vadd.f32 1.0, %v661_v48 }
 0x76e   :  { %662 = vrcp.f32 %v496_v49  ;;  %v508_v52 = vand.u32 2147483648, %v496_v49  ;;  %v506_v54 = vand.u32 2147483647, %v496_v49  ;;  %vm502_vm0 = vweird.f32 %v496_v49 }
 0x770   :  { %v509_v55 = vor.u32 1.1754944e-38, %v508_v52  ;;  %vm507_vm2 = vcmp.eq.f32.partialorder %v506_v54, 8.507059e+37 }
 0x774   :  { %v663_v50 = vpop.eup %662 }
 0x775   :  { %v498_v6 = vmul.f32 %v663_v50, %v496_v49  ;;  %vm503_vm15 = vweird.f32 %v663_v50 }
 0x776   :  { %vm504_vm1 = vmor %vm502_vm0, %vm503_vm15 }
 0x777   :  { %v499_v51 = vsub.f32 1.0, %v498_v6 }
 0x779   :  { %v500_v53 = vmul.f32 %v663_v50, %v499_v51 }
 0x77b   :  { %v501_v10 = vadd.f32 %v663_v50, %v500_v53 }
 0x77d   :  { %v505_v56 = vsel %vm504_vm1, %v663_v50, %v501_v10 }
 0x77e   :  { %v510_v57 = vsel %vm507_vm2, %v509_v55, %v505_v56 }
 0x77f   :  { %v512_v58 = vperm.slane %v510_v57, 0 }
 0x781   :  { %v513_v59 = vmul.f32 %v512_v58, %v433_v19  ;;  %v514_v60 = vmul.f32 %v512_v58, %v434_v21 }
 0x783   :  { %620 = vmatmul.msk.f32.vlgmr.msrb.gmra.mxu3 %vm435_vm14, %v513_v59 }
 0x78b   :  { %621 = vmatmul.msk.f32.gmra.mxu3 %vm435_vm14, %v514_v60 }
 0x806   :  { %v544_v62 = vpop.f32.mrf.mxu3 }
 0x807   :  { %v545_v63 = vadd.f32 %v544_v62, %v516_v61 }
 0x809   :  { %v551_v0 = vadd.f32 %v637_v17, %v545_v63 }
 0x80b   :  { %v622_v2 = vmul.f32 -1.442695, %v551_v0 }
 0x80d   :  { %664 = vpow2.f32 %v622_v2 }
 0x80e   :  { %v547_v4 = vpop.f32.mrf.mxu3 }
 0x80f   :  { %v548_v7 = vadd.f32 %v547_v4, %v518_v3 }
 0x811   :  { %v552_v8 = vadd.f32 %v637_v17, %v548_v7 }
 0x813   :  { %v665_v5 = vpop.eup %664  ;;  %v623_v9 = vmul.f32 -1.442695, %v552_v8 }
 0x814   :  { %v559_v11 = vadd.f32 1.0, %v665_v5 }
 0x815   :  { %666 = vpow2.f32 %v623_v9 }
 0x816   :  { %668 = vrcp.f32 %v559_v11  ;;  %v572_v18 = vand.u32 2147483648, %v559_v11  ;;  %v570_v20 = vand.u32 2147483647, %v559_v11  ;;  %vm566_vm4 = vweird.f32 %v559_v11 }
 0x818   :  { %v573_v23 = vor.u32 1.1754944e-38, %v572_v18  ;;  %vm571_vm7 = vcmp.eq.f32.partialorder %v570_v20, 8.507059e+37 }
 0x81b   :  { %v667_v12 = vpop.eup %666 }
 0x81c   :  { %v669_v13 = vpop.eup %668  ;;  %v560_v14 = vadd.f32 1.0, %v667_v12 }
 0x81d   :  { %v562_v15 = vmul.f32 %v669_v13, %v559_v11  ;;  %vm567_vm3 = vweird.f32 %v669_v13 }
 0x81e   :  { %670 = vrcp.f32 %v560_v14  ;;  %vm568_vm5 = vmor %vm566_vm4, %vm567_vm3  ;;  %v587_v28 = vand.u32 2147483648, %v560_v14  ;;  %v585_v30 = vand.u32 2147483647, %v560_v14  ;;  %vm581_vm9 = vweird.f32 %v560_v14 }
 0x81f   :  { %v563_v16 = vsub.f32 1.0, %v562_v15 }
 0x820   :  { %v588_v32 = vor.u32 1.1754944e-38, %v587_v28  ;;  %vm586_vm11 = vcmp.eq.f32.partialorder %v585_v30, 8.507059e+37 }
 0x821   :  { %v564_v19 = vmul.f32 %v669_v13, %v563_v16 }
 0x823   :  { %v565_v21 = vadd.f32 %v669_v13, %v564_v19 }
 0x824   :  { %v671_v22 = vpop.eup %670 }
 0x825   :  { %v569_v24 = vsel %vm568_vm5, %v669_v13, %v565_v21  ;;  %v577_v25 = vmul.f32 %v671_v22, %v560_v14  ;;  %vm582_vm8 = vweird.f32 %v671_v22 }
 0x826   :  { %v574_v26 = vsel %vm571_vm7, %v573_v23, %v569_v24  ;;  %vm583_vm10 = vmor %vm581_vm9, %vm582_vm8 }
 0x827   :  { %592 = vst.msk [vmem:[%s858_s4] sm:$0xff] %vm591_vm6, %v574_v26  ;;  %v578_v27 = vsub.f32 1.0, %v577_v25 }
 0x829   :  { %v579_v29 = vmul.f32 %v671_v22, %v578_v27 }
 0x82b   :  { %v580_v31 = vadd.f32 %v671_v22, %v579_v29 }
 0x82d   :  { %v584_v33 = vsel %vm583_vm10, %v671_v22, %v580_v31 }
 0x82e   :  { %v589_v34 = vsel %vm586_vm11, %v588_v32, %v584_v33 }
 0x82f   :  { %593 = vst.msk [vmem:[%s858_s4 + $0x8] sm:$0xff] %vm591_vm6, %v589_v34 }
 0x830   :  { %598 = vsyncpa [#allocation3], 1 }
 0x831   :  { %599 = vsyncpa [#allocation5], 1 }

</bundles_post_ra>
